<compile_context>
chip_gen: v6e
topology: v6e:2x2x1
jax: 0.10.0
libtpu: 0.0.40
codegen_flags: <defaults>
</compile_context>

<pallas_src>
import math
import functools

import jax
import jax.numpy as jnp
from jax.experimental import pallas as pl
from jax.experimental.pallas import tpu as pltpu


def _round_up(x, m):
    return ((x + m - 1) // m) * m


def _leaky_relu(x, slope=0.2):
    return jnp.where(x > 0, x, slope * x)


# ----------------------------------------------------------------------------
# Kernels
# ----------------------------------------------------------------------------
def _relation_kernel(ft_ref, nb_ref, wt_ref, wb_ref, r_ref, o_ref, *, dp,
                     matmul_dtype):
    """ft/nb: (tm, dp) packed rows; wt/wb: (dp, 2*dp); r: (1, dp)."""
    ft = ft_ref[...].astype(jnp.float32)                       # (tm, dp)
    nb = nb_ref[...].astype(jnp.float32)                       # (tm, dp)
    # Two K=dp MXU passes, f32 accumulation. Columns [0:dp] are gamma_pre,
    # [dp:2dp] are beta_pre (both packed the same way as the inputs).
    gb = (jnp.dot(ft.astype(matmul_dtype), wt_ref[...],
                  preferred_element_type=jnp.float32)
          + jnp.dot(nb.astype(matmul_dtype), wb_ref[...],
                    preferred_element_type=jnp.float32))        # (tm, 2dp)
    gamma = _leaky_relu(gb[:, :dp])                             # lane-aligned split
    beta = _leaky_relu(gb[:, dp:])
    r = r_ref[...].astype(jnp.float32)                          # (1, dp) broadcasts
    # ft + ((gamma+1)*r + beta) - nb  ==  (ft - nb) + r + gamma*r + beta
    o_ref[...] = ((ft - nb) + r + gamma * r + beta).astype(o_ref.dtype)


def _relation_ablation3_kernel(ft_ref, nb_ref, r_ref, o_ref):
    # m = ft + r - neighbor (pure elementwise, packed lane-dense layout).
    o_ref[...] = (ft_ref[...] + r_ref[...] - nb_ref[...]).astype(o_ref.dtype)


# ----------------------------------------------------------------------------
# Wrapper helpers
# ----------------------------------------------------------------------------
def _pack_factor(n, d):
    """Pack p consecutive rows into one 128-lane row when possible."""
    if d < 128 and 128 % d == 0 and n % (128 // d) == 0:
        return 128 // d
    return 1


def _tile_rows(requested_rows, pack, total_packed_rows):
    """Tile size in packed rows: big enough to beat per-step overhead, capped
    so the grid has >= 2 steps (keeps both v7x TensorCores busy)."""
    tm_p = max(8, _round_up(max(1, requested_rows // pack), 8))
    half = max(8, _round_up(-(-total_packed_rows // 2), 8))
    return min(tm_p, half)


# ----------------------------------------------------------------------------
# Wrapper
# ----------------------------------------------------------------------------
@functools.partial(jax.jit,
                   static_argnames=("ablation", "tm", "use_bf16_matmul"))
def relation_forward(ft, neighbor, w_g1, w_g2, w_b1, w_b2, r, *, ablation=0,
                     tm=4096, use_bf16_matmul=False):
    """Pallas implementation of Relation.forward.

    ft, neighbor : [N, D] float32
    w_* : [D, D] PyTorch nn.Linear weights (out_features, in_features)
    r   : [1, D]
    tm  : row tile in *original* rows.
    """
    N, D = ft.shape
    pack = _pack_factor(N, D)
    dp = pack * D                       # packed lane width (128 for D=32)
    R = N // pack                       # packed row count

    # Free row-major reshapes (no copy): (N, D) -> (R, dp).
    ftp = ft.reshape(R, dp)
    nbp = neighbor.reshape(R, dp)
    rp = jnp.tile(r, (1, pack)) if pack > 1 else r

    tm_eff = _tile_rows(tm, pack, R)
    grid_m = pl.cdiv(R, tm_eff)         # ragged last block: Pallas masks OOB rows

    cparams = pltpu.CompilerParams(dimension_semantics=("parallel",))
    row_spec = pl.BlockSpec((tm_eff, dp), lambda i: (i, 0))
    r_spec = pl.BlockSpec((1, dp), lambda i: (0, 0))            # grid-invariant

    # ---------------- ablation == 3: elementwise path ------------------------
    if ablation == 3:
        out = pl.pallas_call(
            _relation_ablation3_kernel,
            out_shape=jax.ShapeDtypeStruct((R, dp), ft.dtype),
            grid_spec=pltpu.PrefetchScalarGridSpec(
                num_scalar_prefetch=0,
                grid=(grid_m,),
                in_specs=[row_spec, row_spec, r_spec],
                out_specs=row_spec,
            ),
            compiler_params=cparams,
            cost_estimate=pl.CostEstimate(
                flops=2 * R * dp, transcendentals=0,
                bytes_accessed=3 * R * dp * 4 + dp * 4),
        )(ftp, nbp, rp)
        return out.reshape(N, D)

    # ---------------- main path: FiLM + residual ------------------------------
    matmul_dtype = jnp.bfloat16 if use_bf16_matmul else jnp.float32

    def _blkdiag_t(w):
        # block-diagonal expansion of w.T: (D, D) -> (dp, dp) with `pack` copies
        wt = w.T
        if pack == 1:
            return wt
        return jnp.kron(jnp.eye(pack, dtype=wt.dtype), wt)

    W_top = jnp.concatenate([_blkdiag_t(w_g1), _blkdiag_t(w_b1)],
                            axis=1).astype(matmul_dtype)        # (dp, 2dp)
    W_bot = jnp.concatenate([_blkdiag_t(w_g2), _blkdiag_t(w_b2)],
                            axis=1).astype(matmul_dtype)        # (dp, 2dp)

    w_spec = pl.BlockSpec((dp, 2 * dp), lambda i: (0, 0))       # grid-invariant
    wbytes = 2 * dp * (2 * dp) * jnp.dtype(matmul_dtype).itemsize

    kernel = functools.partial(_relation_kernel, dp=dp, matmul_dtype=matmul_dtype)

    out = pl.pallas_call(
        kernel,
        out_shape=jax.ShapeDtypeStruct((R, dp), ft.dtype),
        grid_spec=pltpu.PrefetchScalarGridSpec(
            num_scalar_prefetch=0,
            grid=(grid_m,),
            in_specs=[row_spec, row_spec, w_spec, w_spec, r_spec],
            out_specs=row_spec,
        ),
        compiler_params=cparams,
        cost_estimate=pl.CostEstimate(
            flops=2 * 2 * R * dp * (2 * dp) + 8 * R * dp,
            transcendentals=0,
            bytes_accessed=3 * R * dp * 4 + wbytes + dp * 4),
    )(ftp, nbp, W_top, W_bot, rp)

    return out.reshape(N, D)


# ----------------------------------------------------------------------------
# Pure-JAX reference
# ----------------------------------------------------------------------------
def _reference(ft, neighbor, w_g1, w_g2, w_b1, w_b2, r, ablation=0):
    if ablation == 3:
        return ft + r - neighbor
    lrelu = lambda x: jnp.where(x > 0, x, 0.2 * x)
    gamma = lrelu(ft @ w_g1.T + neighbor @ w_g2.T) + 1.0
    beta = lrelu(ft @ w_b1.T + neighbor @ w_b2.T)
    r_v = gamma * r + beta
    return ft + r_v - neighbor


if __name__ == "__main__":
    # Relation(in_features=32); N=1024 -> 256 packed rows -> grid of 2 steps.
    N, D = 1024, 32
    key = jax.random.PRNGKey(0)
    k_ft, k_nb, k_g1, k_g2, k_b1, k_b2, k_r = jax.random.split(key, 7)

    ft = jax.random.normal(k_ft, (N, D), dtype=jnp.float32)
    neighbor = jax.random.normal(k_nb, (N, D), dtype=jnp.float32)

    bound = 1.0 / math.sqrt(D)
    w_g1 = jax.random.uniform(k_g1, (D, D), jnp.float32, -bound, bound)
    w_g2 = jax.random.uniform(k_g2, (D, D), jnp.float32, -bound, bound)
    w_b1 = jax.random.uniform(k_b1, (D, D), jnp.float32, -bound, bound)
    w_b2 = jax.random.uniform(k_b2, (D, D), jnp.float32, -bound, bound)
    r = jax.random.uniform(k_r, (1, D), jnp.float32, -bound, bound)

    # --- main path, f32 matmul ---
    out = jax.block_until_ready(
        relation_forward(ft, neighbor, w_g1, w_g2, w_b1, w_b2, r, ablation=0))
    ref = _reference(ft, neighbor, w_g1, w_g2, w_b1, w_b2, r, ablation=0)
    assert out.shape == (N, D) and out.dtype == jnp.float32
    assert jnp.allclose(out, ref, atol=1e-5, rtol=1e-5)

    # --- main path, bf16 matmul operands (fast MXU path), f32 epilogue ---
    out_bf = jax.block_until_ready(
        relation_forward(ft, neighbor, w_g1, w_g2, w_b1, w_b2, r, ablation=0,
                         use_bf16_matmul=True))
    assert jnp.allclose(out_bf, ref, atol=5e-2, rtol=5e-2)

    # --- ragged N (exercises cdiv grid + OOB-masked last block, no pad/slice) ---
    Nr = 200
    out_r = jax.block_until_ready(
        relation_forward(ft[:Nr], neighbor[:Nr], w_g1, w_g2, w_b1, w_b2, r,
                         ablation=0))
    assert jnp.allclose(out_r, ref[:Nr], atol=1e-5, rtol=1e-5)

    # --- ablation == 3 elementwise path (lane-dense packed layout) ---
    out3 = jax.block_until_ready(
        relation_forward(ft, neighbor, w_g1, w_g2, w_b1, w_b2, r, ablation=3))
    assert jnp.allclose(
        out3, _reference(ft, neighbor, w_g1, w_g2, w_b1, w_b2, r, ablation=3),
        atol=1e-6)

    print("KERNEL_OK")
</pallas_src>

<mosaic_0001>
module attributes {stable_mosaic.version = 11 : i64} {
  func.func @_relation_kernel(%arg0: i32, %arg1: memref<128x128xf32, #tpu.memory_space<vmem>>, %arg2: memref<128x128xf32, #tpu.memory_space<vmem>>, %arg3: memref<128x256xf32, #tpu.memory_space<vmem>>, %arg4: memref<128x256xf32, #tpu.memory_space<vmem>>, %arg5: memref<1x128xf32, #tpu.memory_space<vmem>>, %arg6: memref<128x128xf32, #tpu.memory_space<vmem>>) attributes {dimension_semantics = [#tpu.dimension_semantics<parallel>], iteration_bounds = array<i64: 2>, scalar_prefetch = 0 : i64, scratch_operands = 0 : i64, tpu.core_type = #tpu.core_type<tc>, window_params = [{transform_indices = @transform_0, window_bounds = array<i64: 128, 128>}, {transform_indices = @transform_1, window_bounds = array<i64: 128, 128>}, {pipeline_mode = #tpu.pipeline_mode<synchronous>, transform_indices = @transform_2, window_bounds = array<i64: 128, 256>}, {pipeline_mode = #tpu.pipeline_mode<synchronous>, transform_indices = @transform_3, window_bounds = array<i64: 128, 256>}, {pipeline_mode = #tpu.pipeline_mode<synchronous>, transform_indices = @transform_4, window_bounds = array<i64: 1, 128>}, {transform_indices = @transform_5, window_bounds = array<i64: 128, 128>}]} {
    %c0 = arith.constant 0 : index
    %c0_0 = arith.constant 0 : index
    %0 = vector.load %arg1[%c0, %c0_0] : memref<128x128xf32, #tpu.memory_space<vmem>>, vector<128x128xf32>
    %c0_1 = arith.constant 0 : index
    %c0_2 = arith.constant 0 : index
    %1 = vector.load %arg2[%c0_1, %c0_2] : memref<128x128xf32, #tpu.memory_space<vmem>>, vector<128x128xf32>
    %c0_3 = arith.constant 0 : index
    %c0_4 = arith.constant 0 : index
    %2 = vector.load %arg3[%c0_3, %c0_4] : memref<128x256xf32, #tpu.memory_space<vmem>>, vector<128x256xf32>
    %cst = arith.constant dense<0.000000e+00> : vector<128x256xf32>
    %3 = tpu.matmul %0, %2, %cst {dimension_numbers = #tpu.dot_dimension_numbers<[1], [0], [0], [1], [0, 0, 1, 1], [], []>} : vector<128x128xf32>, vector<128x256xf32>, vector<128x256xf32> -> vector<128x256xf32>
    %c0_5 = arith.constant 0 : index
    %c0_6 = arith.constant 0 : index
    %4 = vector.load %arg4[%c0_5, %c0_6] : memref<128x256xf32, #tpu.memory_space<vmem>>, vector<128x256xf32>
    %cst_7 = arith.constant dense<0.000000e+00> : vector<128x256xf32>
    %5 = tpu.matmul %1, %4, %cst_7 {dimension_numbers = #tpu.dot_dimension_numbers<[1], [0], [0], [1], [0, 0, 1, 1], [], []>} : vector<128x128xf32>, vector<128x256xf32>, vector<128x256xf32> -> vector<128x256xf32>
    %6 = arith.addf %3, %5 : vector<128x256xf32>
    %7 = vector.extract_strided_slice %6 {offsets = [0, 0], sizes = [128, 128], strides = [1, 1]} : vector<128x256xf32> to vector<128x128xf32>
    %cst_8 = arith.constant 0.000000e+00 : f32
    %8 = vector.broadcast %cst_8 : f32 to vector<128x128xf32>
    %9 = arith.cmpf ogt, %7, %8 : vector<128x128xf32>
    %cst_9 = arith.constant 2.000000e-01 : f32
    %10 = vector.broadcast %cst_9 : f32 to vector<128x128xf32>
    %11 = arith.mulf %10, %7 : vector<128x128xf32>
    %12 = arith.select %9, %7, %11 : vector<128x128xi1>, vector<128x128xf32>
    %13 = vector.extract_strided_slice %6 {offsets = [0, 128], sizes = [128, 128], strides = [1, 1]} : vector<128x256xf32> to vector<128x128xf32>
    %cst_10 = arith.constant 0.000000e+00 : f32
    %14 = vector.broadcast %cst_10 : f32 to vector<128x128xf32>
    %15 = arith.cmpf ogt, %13, %14 : vector<128x128xf32>
    %cst_11 = arith.constant 2.000000e-01 : f32
    %16 = vector.broadcast %cst_11 : f32 to vector<128x128xf32>
    %17 = arith.mulf %16, %13 : vector<128x128xf32>
    %18 = arith.select %15, %13, %17 : vector<128x128xi1>, vector<128x128xf32>
    %c0_12 = arith.constant 0 : index
    %c0_13 = arith.constant 0 : index
    %19 = vector.load %arg5[%c0_12, %c0_13] : memref<1x128xf32, #tpu.memory_space<vmem>>, vector<1x128xf32>
    %20 = arith.subf %0, %1 : vector<128x128xf32>
    %21 = vector.broadcast %19 : vector<1x128xf32> to vector<128x128xf32>
    %22 = arith.addf %20, %21 : vector<128x128xf32>
    %23 = vector.broadcast %19 : vector<1x128xf32> to vector<128x128xf32>
    %24 = arith.mulf %12, %23 : vector<128x128xf32>
    %25 = arith.addf %22, %24 : vector<128x128xf32>
    %26 = arith.addf %25, %18 : vector<128x128xf32>
    %c0_14 = arith.constant 0 : index
    %c0_15 = arith.constant 0 : index
    %27 = vector.load %arg6[%c0_14, %c0_15] : memref<128x128xf32, #tpu.memory_space<vmem>>, vector<128x128xf32>
    tpu.vector_store %arg6[%c0_14, %c0_15], %26 {strides = array<i32>} : memref<128x128xf32, #tpu.memory_space<vmem>>, vector<128x128xf32>,
    return
  }
  func.func @transform_0(%arg0: i32) -> (i32, i32) {
    %c0_i32 = arith.constant 0 : i32
    %c0_i32_0 = arith.constant 0 : i32
    return %arg0, %c0_i32 : i32, i32
  }
  func.func @transform_1(%arg0: i32) -> (i32, i32) {
    %c0_i32 = arith.constant 0 : i32
    %c0_i32_0 = arith.constant 0 : i32
    return %arg0, %c0_i32 : i32, i32
  }
  func.func @transform_2(%arg0: i32) -> (i32, i32) {
    %c0_i32 = arith.constant 0 : i32
    %c0_i32_0 = arith.constant 0 : i32
    %c0_i32_1 = arith.constant 0 : i32
    return %c0_i32, %c0_i32_0 : i32, i32
  }
  func.func @transform_3(%arg0: i32) -> (i32, i32) {
    %c0_i32 = arith.constant 0 : i32
    %c0_i32_0 = arith.constant 0 : i32
    %c0_i32_1 = arith.constant 0 : i32
    return %c0_i32, %c0_i32_0 : i32, i32
  }
  func.func @transform_4(%arg0: i32) -> (i32, i32) {
    %c0_i32 = arith.constant 0 : i32
    %c0_i32_0 = arith.constant 0 : i32
    %c0_i32_1 = arith.constant 0 : i32
    return %c0_i32, %c0_i32_0 : i32, i32
  }
  func.func @transform_5(%arg0: i32) -> (i32, i32) {
    %c0_i32 = arith.constant 0 : i32
    %c0_i32_0 = arith.constant 0 : i32
    return %arg0, %c0_i32 : i32, i32
  }
}

</mosaic_0001>

<bundles_post_ra>
// kernel: relation_forward.1
= control target key start
LH: loop header
LB: loop body
LE: loop exit
PB: predicated region body
PF: predicated region fallthrough
CT: control target
= control target key end

     0   :  { %s997_s18 = smov 0   ;;  %s1519_s0 = inlined_call_operand.vmem [shape: f32[256,128], index: 0, kind: input, shape index: {}]   ;;  %s1520_s1 = inlined_call_operand.vmem [shape: f32[256,128], index: 1, kind: input, shape index: {}]   ;;  %s1521_s2 = inlined_call_operand.vmem [shape: f32[128,256], index: 2, kind: input, shape index: {}]   ;;  %s1522_s3 = inlined_call_operand.vmem [shape: f32[128,256], index: 3, kind: input, shape index: {}]   ;;  %s1523_s4 = inlined_call_operand.vmem [shape: f32[1,128], index: 4, kind: input, shape index: {}]   ;;  %s1524_s5 = inlined_call_operand.vmem [shape: f32[256,128], index: 5, kind: output, shape index: {}]  }
   0x1 LB: > { %s935_s19 = sadd.s32 4294967295, %s964_s18   ;;  %p939_p0 = scmp.ge.s32.totalorder %s964_s18, 1  ;;  %s964_s18 = sphi %s997_s18, %s15_s18  }
   0x2   : > { %p199_p1 = scmp.lt.s32.totalorder %s964_s18, 3 }
   0x4   : > { %p200_p2 = pnand %p939_p0, %p199_p1 }
   0x5   : > { %s1047_s25 = sshll.u32 (!%p200_p2), %s935_s19, 4 }
   0x6   : > { %203 = sbr.rel (%p200_p2) target bundleno = 311 (0x137), region = 40  ;;  %p233_p3 = scmp.lt.s32.totalorder (!%p200_p2), %s1047_s25, 31 }
   0xb   : > { %v345_v0 = vld [vmem:[%s1522_s3 + $0xf8] sm:$0xff]  ;;  %v344_v2 = vld [vmem:[%s1522_s3 + $0xf0] sm:$0xff]  ;;  %v343_v4 = vld [vmem:[%s1522_s3 + $0xe8] sm:$0xff]  ;;  %s1527_s25 = smov (!%p233_p3, %s1047_s25), 31 }
   0xc   : > { %v313_v1 = vld [vmem:[%s1521_s2 + $0xf8] sm:$0xff]  ;;  %346 = vmatprep.subr.mxu0 %v345_v0  ;;  %v312_v3 = vld [vmem:[%s1521_s2 + $0xf0] sm:$0xff]  ;;  %v311_v5 = vld [vmem:[%s1521_s2 + $0xe8] sm:$0xff]  ;;  %s1119_s23 = sshll.u32 %s1527_s25, 3 }
   0xd   : > { %507 = vmatprep.subr.mxu1 %v313_v1  ;;  %347 = vmatpush1.msra.mxu0 %v344_v2  ;;  %v342_v6 = vld [vmem:[%s1522_s3 + $0xe0] sm:$0xff]  ;;  %v341_v8 = vld [vmem:[%s1522_s3 + $0xd8] sm:$0xff]  ;;  %v340_v10 = vld [vmem:[%s1522_s3 + $0xd0] sm:$0xff]  ;;  %s1149_s16 = scalar_lea.vmem %s1520_s1, %s1119_s23  ;;  %s1155_s21 = scalar_lea.vmem %s1519_s0, %s1119_s23 }
   0xe   : > { %508 = vmatpush1.msra.mxu1 %v312_v3  ;;  %v310_v7 = vld [vmem:[%s1521_s2 + $0xe0] sm:$0xff]  ;;  %348 = vmatprep.subr.mxu0 %v343_v4  ;;  %v309_v9 = vld [vmem:[%s1521_s2 + $0xd8] sm:$0xff]  ;;  %v308_v11 = vld [vmem:[%s1521_s2 + $0xd0] sm:$0xff]  ;;  %s1427_s22 = scalar_lea.vmem %s1524_s5, %s1119_s23 }
   0xf   : > { %509 = vmatprep.subr.mxu1 %v311_v5  ;;  %349 = vmatpush1.msra.mxu0 %v342_v6  ;;  %v339_v12 = vld [vmem:[%s1522_s3 + $0xc8] sm:$0xff]  ;;  %v338_v14 = vld [vmem:[%s1522_s3 + $0xc0] sm:$0xff]  ;;  %v337_v16 = vld [vmem:[%s1522_s3 + $0xb8] sm:$0xff] }
  0x10   : > { %510 = vmatpush1.msra.mxu1 %v310_v7  ;;  %v307_v13 = vld [vmem:[%s1521_s2 + $0xc8] sm:$0xff]  ;;  %350 = vmatprep.subr.mxu0 %v341_v8  ;;  %v306_v15 = vld [vmem:[%s1521_s2 + $0xc0] sm:$0xff]  ;;  %v305_v17 = vld [vmem:[%s1521_s2 + $0xb8] sm:$0xff] }
  0x11   : > { %511 = vmatprep.subr.mxu1 %v309_v9  ;;  %351 = vmatpush1.msra.mxu0 %v340_v10  ;;  %v336_v18 = vld [vmem:[%s1522_s3 + $0xb0] sm:$0xff]  ;;  %v335_v20 = vld [vmem:[%s1522_s3 + $0xa8] sm:$0xff]  ;;  %v334_v22 = vld [vmem:[%s1522_s3 + $0xa0] sm:$0xff] }
  0x12   : > { %512 = vmatpush1.msra.mxu1 %v308_v11  ;;  %352 = vmatprep.subr.mxu0 %v339_v12  ;;  %v304_v19 = vld [vmem:[%s1521_s2 + $0xb0] sm:$0xff]  ;;  %v303_v21 = vld [vmem:[%s1521_s2 + $0xa8] sm:$0xff]  ;;  %v302_v23 = vld [vmem:[%s1521_s2 + $0xa0] sm:$0xff] }
  0x13   : > { %513 = vmatprep.subr.mxu1 %v307_v13  ;;  %353 = vmatpush1.msra.mxu0 %v338_v14  ;;  %v333_v24 = vld [vmem:[%s1522_s3 + $0x98] sm:$0xff]  ;;  %v332_v26 = vld [vmem:[%s1522_s3 + $0x90] sm:$0xff]  ;;  %v331_v28 = vld [vmem:[%s1522_s3 + $0x88] sm:$0xff] }
  0x14   : > { %514 = vmatpush1.msra.mxu1 %v306_v15  ;;  %354 = vmatprep.subr.mxu0 %v337_v16  ;;  %v301_v25 = vld [vmem:[%s1521_s2 + $0x98] sm:$0xff]  ;;  %v300_v27 = vld [vmem:[%s1521_s2 + $0x90] sm:$0xff]  ;;  %v299_v29 = vld [vmem:[%s1521_s2 + $0x88] sm:$0xff] }
  0x15   : > { %515 = vmatprep.subr.mxu1 %v305_v17  ;;  %355 = vmatpush1.msra.mxu0 %v336_v18  ;;  %v330_v30 = vld [vmem:[%s1522_s3 + $0x80] sm:$0xff]  ;;  %v329_v32 = vld [vmem:[%s1522_s3 + $0x78] sm:$0xff]  ;;  %v328_v34 = vld [vmem:[%s1522_s3 + $0x70] sm:$0xff] }
  0x16   : > { %516 = vmatpush1.msra.mxu1 %v304_v19  ;;  %356 = vmatprep.subr.mxu0 %v335_v20  ;;  %v298_v31 = vld [vmem:[%s1521_s2 + $0x80] sm:$0xff]  ;;  %v297_v33 = vld [vmem:[%s1521_s2 + $0x78] sm:$0xff]  ;;  %v296_v35 = vld [vmem:[%s1521_s2 + $0x70] sm:$0xff] }
  0x17   : > { %517 = vmatprep.subr.mxu1 %v303_v21  ;;  %357 = vmatpush1.msra.mxu0 %v334_v22  ;;  %v327_v36 = vld [vmem:[%s1522_s3 + $0x68] sm:$0xff]  ;;  %v326_v38 = vld [vmem:[%s1522_s3 + $0x60] sm:$0xff]  ;;  %v325_v40 = vld [vmem:[%s1522_s3 + $0x58] sm:$0xff] }
  0x18   : > { %518 = vmatpush1.msra.mxu1 %v302_v23  ;;  %358 = vmatprep.subr.mxu0 %v333_v24  ;;  %v295_v37 = vld [vmem:[%s1521_s2 + $0x68] sm:$0xff]  ;;  %v294_v39 = vld [vmem:[%s1521_s2 + $0x60] sm:$0xff]  ;;  %v293_v41 = vld [vmem:[%s1521_s2 + $0x58] sm:$0xff] }
  0x19   : > { %519 = vmatprep.subr.mxu1 %v301_v25  ;;  %359 = vmatpush1.msra.mxu0 %v332_v26  ;;  %v324_v42 = vld [vmem:[%s1522_s3 + $0x50] sm:$0xff]  ;;  %v323_v44 = vld [vmem:[%s1522_s3 + $0x48] sm:$0xff]  ;;  %v322_v46 = vld [vmem:[%s1522_s3 + $0x40] sm:$0xff] }
  0x1a   : > { %520 = vmatpush1.msra.mxu1 %v300_v27  ;;  %360 = vmatprep.subr.mxu0 %v331_v28  ;;  %v292_v43 = vld [vmem:[%s1521_s2 + $0x50] sm:$0xff]  ;;  %v291_v45 = vld [vmem:[%s1521_s2 + $0x48] sm:$0xff]  ;;  %v290_v47 = vld [vmem:[%s1521_s2 + $0x40] sm:$0xff] }
  0x1b   : > { %521 = vmatprep.subr.mxu1 %v299_v29  ;;  %361 = vmatpush1.msra.mxu0 %v330_v30  ;;  %v321_v48 = vld [vmem:[%s1522_s3 + $0x38] sm:$0xff]  ;;  %v320_v50 = vld [vmem:[%s1522_s3 + $0x30] sm:$0xff]  ;;  %v1182_v52 = vld [vmem:[%s1149_s16] sm:$0xff] }
  0x1c   : > { %522 = vmatpush1.msra.mxu1 %v298_v31  ;;  %362 = vmatprep.subr.mxu0 %v329_v32  ;;  %v289_v49 = vld [vmem:[%s1521_s2 + $0x38] sm:$0xff]  ;;  %v288_v51 = vld [vmem:[%s1521_s2 + $0x30] sm:$0xff]  ;;  %v1185_v53 = vld [vmem:[%s1155_s21] sm:$0xff] }
  0x1d   : > { %523 = vmatprep.subr.mxu1 %v297_v33  ;;  %363 = vmatpush1.msra.mxu0 %v328_v34  ;;  %v319_v54 = vld [vmem:[%s1522_s3 + $0x28] sm:$0xff]  ;;  %v765_v56 = vsub.f32 %v1185_v53, %v1182_v52  ;;  %v318_v59 = vld [vmem:[%s1522_s3 + $0x20] sm:$0xff]  ;;  %v1210_v62 = vld [vmem:[%s1149_s16 + $0x10] sm:$0xff] }
  0x1e   : > { %524 = vmatpush1.msra.mxu1 %v296_v35  ;;  %364 = vmatprep.subr.mxu0 %v327_v36  ;;  %v287_v55 = vld [vmem:[%s1521_s2 + $0x28] sm:$0xff]  ;;  %v286_v60 = vld [vmem:[%s1521_s2 + $0x20] sm:$0xff]  ;;  %v1213_v63 = vld [vmem:[%s1155_s21 + $0x10] sm:$0xff] }
  0x1f   : > { %525 = vmatprep.subr.mxu1 %v295_v37  ;;  %365 = vmatpush1.msra.mxu0 %v326_v38  ;;  %v1196_v57 = vld [vmem:[%s1149_s16 + $0x8] sm:$0xff]  ;;  %v1216_v0 = vld [vmem:[%s1149_s16 + $0x18] sm:$0xff]  ;;  %v767_v3 = vsub.f32 %v1213_v63, %v1210_v62  ;;  %v1230_v5 = vld [vmem:[%s1149_s16 + $0x20] sm:$0xff] }
  0x20   : > { %526 = vmatpush1.msra.mxu1 %v294_v39  ;;  %366 = vmatprep.subr.mxu0 %v325_v40  ;;  %v1199_v58 = vld [vmem:[%s1155_s21 + $0x8] sm:$0xff]  ;;  %v317_v1 = vld [vmem:[%s1522_s3 + $0x18] sm:$0xff]  ;;  %v1233_v6 = vld [vmem:[%s1155_s21 + $0x20] sm:$0xff] }
  0x21   : > { %527 = vmatprep.subr.mxu1 %v293_v41  ;;  %367 = vmatpush1.msra.mxu0 %v324_v42  ;;  %v766_v61 = vsub.f32 %v1199_v58, %v1196_v57  ;;  %v285_v2 = vld [vmem:[%s1521_s2 + $0x18] sm:$0xff]  ;;  %v316_v7 = vld [vmem:[%s1522_s3 + $0x10] sm:$0xff]  ;;  %v769_v10 = vsub.f32 %v1233_v6, %v1230_v5  ;;  %v1246_v11 = vld [vmem:[%s1149_s16 + $0x28] sm:$0xff] }
  0x22   : > { %528 = vmatpush1.msra.mxu1 %v292_v43  ;;  %368 = vmatprep.subr.mxu0 %v323_v44  ;;  %v1227_v4 = vld [vmem:[%s1155_s21 + $0x18] sm:$0xff]  ;;  %v284_v8 = vld [vmem:[%s1521_s2 + $0x10] sm:$0xff]  ;;  %v1249_v12 = vld [vmem:[%s1155_s21 + $0x28] sm:$0xff]  ;;  %v966_v43 = vmov 0.0  }
  0x23   : > { %529 = vmatprep.subr.mxu1 %v291_v45  ;;  %369 = vmatpush1.msra.mxu0 %v322_v46  ;;  %v768_v9 = vsub.f32 %v1227_v4, %v1216_v0  ;;  %v1252_v13 = vld [vmem:[%s1149_s16 + $0x30] sm:$0xff]  ;;  %v315_v14 = vld [vmem:[%s1522_s3 + $0x8] sm:$0xff]  ;;  %v770_v16 = vsub.f32 %v1249_v12, %v1246_v11  ;;  %v1266_v18 = vld [vmem:[%s1149_s16 + $0x38] sm:$0xff] }
  0x24   : > { %530 = vmatpush1.msra.mxu1 %v290_v47  ;;  %370 = vmatprep.subr.mxu0 %v321_v48  ;;  %v283_v15 = vld [vmem:[%s1521_s2 + $0x8] sm:$0xff]  ;;  %v1263_v17 = vld [vmem:[%s1155_s21 + $0x30] sm:$0xff]  ;;  %v1269_v19 = vld [vmem:[%s1155_s21 + $0x38] sm:$0xff] }
  0x25   : > { %531 = vmatprep.subr.mxu1 %v289_v49  ;;  %371 = vmatpush1.msra.mxu0 %v320_v50  ;;  %v314_v20 = vld [vmem:[%s1522_s3] sm:$0xff]  ;;  %v771_v21 = vsub.f32 %v1263_v17, %v1252_v13  ;;  %v1283_v24 = vld [vmem:[%s1149_s16 + $0x48] sm:$0xff]  ;;  %v772_v25 = vsub.f32 %v1269_v19, %v1266_v18  ;;  %v1293_v28 = vld [vmem:[%s1149_s16 + $0x50] sm:$0xff] }
  0x26   : > { %532 = vmatpush1.msra.mxu1 %v288_v51  ;;  %372 = vmatprep.subr.mxu0 %v319_v54  ;;  %v1277_v22 = vld [vmem:[%s1149_s16 + $0x40] sm:$0xff]  ;;  %v1290_v27 = vld [vmem:[%s1155_s21 + $0x48] sm:$0xff]  ;;  %v1296_v29 = vld [vmem:[%s1155_s21 + $0x50] sm:$0xff] }
  0x27   : > { %533 = vmatprep.subr.mxu1 %v287_v55  ;;  %v1280_v23 = vld [vmem:[%s1155_s21 + $0x40] sm:$0xff]  ;;  %373 = vmatpush1.msra.mxu0 %v318_v59  ;;  %v774_v31 = vsub.f32 %v1290_v27, %v1283_v24  ;;  %v775_v32 = vsub.f32 %v1296_v29, %v1293_v28  ;;  %v1306_v33 = vld [vmem:[%s1149_s16 + $0x58] sm:$0xff]  ;;  %v1320_v38 = vld [vmem:[%s1149_s16 + $0x68] sm:$0xff] }
  0x28   : > { %534 = vmatpush1.msra.mxu1 %v286_v60  ;;  %v773_v26 = vsub.f32 %v1280_v23, %v1277_v22  ;;  %374 = vmatprep.subr.mxu0 %v317_v1  ;;  %v282_v30 = vld [vmem:[%s1521_s2] sm:$0xff]  ;;  %v1309_v34 = vld [vmem:[%s1155_s21 + $0x58] sm:$0xff]  ;;  %v1325_v40 = vld [vmem:[%s1155_s21 + $0x68] sm:$0xff] }
  0x29   : > { %535 = vmatprep.subr.mxu1 %v285_v2  ;;  %375 = vmatpush1.msra.mxu0 %v316_v7  ;;  %v776_v35 = vsub.f32 %v1309_v34, %v1306_v33  ;;  %v1314_v36 = vld [vmem:[%s1149_s16 + $0x60] sm:$0xff]  ;;  %v1328_v41 = vld [vmem:[%s1149_s16 + $0x70] sm:$0xff]  ;;  %v778_v44 = vsub.f32 %v1325_v40, %v1320_v38  ;;  %v1339_v46 = vld [vmem:[%s1149_s16 + $0x78] sm:$0xff] }
  0x2a   : > { %536 = vmatpush1.msra.mxu1 %v284_v8  ;;  %v1317_v37 = vld [vmem:[%s1155_s21 + $0x60] sm:$0xff]  ;;  %376 = vmatprep.subr.mxu0 %v315_v14  ;;  %v1331_v42 = vld [vmem:[%s1155_s21 + $0x70] sm:$0xff]  ;;  %v1342_v47 = vld [vmem:[%s1155_s21 + $0x78] sm:$0xff] }
  0x2b   : > { %537 = vmatprep.subr.mxu1 %v283_v15  ;;  %v777_v39 = vsub.f32 %v1317_v37, %v1314_v36  ;;  %377 = vmatpush1.msra.mxu0 %v314_v20  ;;  %v779_v45 = vsub.f32 %v1331_v42, %v1328_v41  ;;  %v1412_v51 = vld [vmem:[%s1523_s4] ss:$0 sm:$0xff] }
  0x2c   : > { %410 = vmatprep.mubr.f32.mxu0 %v966_v43  ;;  %538 = vmatpush1.msra.mxu1 %v282_v30  ;;  %v787_v2 = vadd.f32 %v1412_v51, %v765_v56 }
  0x2d   : > { %571 = vmatprep.mubr.f32.mxu1 %v966_v43  ;;  %411 = vmatmul.mubr.f32.vlgmr.msra.gmra.mxu0 %v1182_v52  ;;  %v788_v52 = vadd.f32 %v1412_v51, %v766_v61 }
  0x2e   : > { %572 = vmatmul.mubr.f32.vlgmr.msra.gmra.mxu1 %v1185_v53  ;;  %416 = vmatprep.mubr.f32.mxu0 %v966_v43 }
  0x2f   : > { %577 = vmatprep.mubr.f32.mxu1 %v966_v43 }
  0x31   : > { %417 = vmatmul.mubr.f32.gmra.mxu0 %v1196_v57 }
  0x32   : > { %578 = vmatmul.mubr.f32.gmra.mxu1 %v1199_v58  ;;  %422 = vmatprep.mubr.f32.mxu0 %v966_v43 }
  0x33   : > { %583 = vmatprep.mubr.f32.mxu1 %v966_v43 }
  0x35   : > { %423 = vmatmul.mubr.f32.gmra.mxu0 %v1210_v62 }
  0x36   : > { %584 = vmatmul.mubr.f32.gmra.mxu1 %v1213_v63  ;;  %428 = vmatprep.mubr.f32.mxu0 %v966_v43  ;;  %v790_v63 = vadd.f32 %v1412_v51, %v768_v9 }
  0x37   : > { %589 = vmatprep.mubr.f32.mxu1 %v966_v43 }
  0x39   : > { %429 = vmatmul.mubr.f32.gmra.mxu0 %v1216_v0 }
  0x3a   : > { %590 = vmatmul.mubr.f32.gmra.mxu1 %v1227_v4  ;;  %434 = vmatprep.mubr.f32.mxu0 %v966_v43  ;;  %v791_v4 = vadd.f32 %v1412_v51, %v769_v10 }
  0x3b   : > { %595 = vmatprep.mubr.f32.mxu1 %v966_v43 }
  0x3d   : > { %435 = vmatmul.mubr.f32.gmra.mxu0 %v1230_v5 }
  0x3e   : > { %596 = vmatmul.mubr.f32.gmra.mxu1 %v1233_v6  ;;  %440 = vmatprep.mubr.f32.mxu0 %v966_v43  ;;  %v792_v6 = vadd.f32 %v1412_v51, %v770_v16 }
  0x3f   : > { %601 = vmatprep.mubr.f32.mxu1 %v966_v43 }
  0x41   : > { %441 = vmatmul.mubr.f32.gmra.mxu0 %v1246_v11 }
  0x42   : > { %602 = vmatmul.mubr.f32.gmra.mxu1 %v1249_v12  ;;  %446 = vmatprep.mubr.f32.mxu0 %v966_v43  ;;  %v793_v12 = vadd.f32 %v1412_v51, %v771_v21 }
  0x43   : > { %607 = vmatprep.mubr.f32.mxu1 %v966_v43 }
  0x45   : > { %447 = vmatmul.mubr.f32.gmra.mxu0 %v1252_v13 }
  0x46   : > { %608 = vmatmul.mubr.f32.gmra.mxu1 %v1263_v17  ;;  %452 = vmatprep.mubr.f32.mxu0 %v966_v43  ;;  %v794_v17 = vadd.f32 %v1412_v51, %v772_v25 }
  0x47   : > { %613 = vmatprep.mubr.f32.mxu1 %v966_v43 }
  0x49   : > { %453 = vmatmul.mubr.f32.gmra.mxu0 %v1266_v18 }
  0x4a   : > { %614 = vmatmul.mubr.f32.gmra.mxu1 %v1269_v19  ;;  %458 = vmatprep.mubr.f32.mxu0 %v966_v43  ;;  %v795_v19 = vadd.f32 %v1412_v51, %v773_v26 }
  0x4b   : > { %619 = vmatprep.mubr.f32.mxu1 %v966_v43 }
  0x4d   : > { %459 = vmatmul.mubr.f32.gmra.mxu0 %v1277_v22 }
  0x4e   : > { %620 = vmatmul.mubr.f32.gmra.mxu1 %v1280_v23  ;;  %464 = vmatprep.mubr.f32.mxu0 %v966_v43  ;;  %v796_v23 = vadd.f32 %v1412_v51, %v774_v31 }
  0x4f   : > { %625 = vmatprep.mubr.f32.mxu1 %v966_v43 }
  0x51   : > { %465 = vmatmul.mubr.f32.gmra.mxu0 %v1283_v24 }
  0x52   : > { %626 = vmatmul.mubr.f32.gmra.mxu1 %v1290_v27  ;;  %470 = vmatprep.mubr.f32.mxu0 %v966_v43  ;;  %v797_v27 = vadd.f32 %v1412_v51, %v775_v32 }
  0x53   : > { %631 = vmatprep.mubr.f32.mxu1 %v966_v43 }
  0x55   : > { %471 = vmatmul.mubr.f32.gmra.mxu0 %v1293_v28 }
  0x56   : > { %632 = vmatmul.mubr.f32.gmra.mxu1 %v1296_v29  ;;  %476 = vmatprep.mubr.f32.mxu0 %v966_v43  ;;  %v798_v29 = vadd.f32 %v1412_v51, %v776_v35 }
  0x57   : > { %637 = vmatprep.mubr.f32.mxu1 %v966_v43 }
  0x59   : > { %477 = vmatmul.mubr.f32.gmra.mxu0 %v1306_v33 }
  0x5a   : > { %638 = vmatmul.mubr.f32.gmra.mxu1 %v1309_v34  ;;  %482 = vmatprep.mubr.f32.mxu0 %v966_v43  ;;  %v799_v34 = vadd.f32 %v1412_v51, %v777_v39 }
  0x5b   : > { %643 = vmatprep.mubr.f32.mxu1 %v966_v43 }
  0x5d   : > { %483 = vmatmul.mubr.f32.gmra.mxu0 %v1314_v36 }
  0x5e   : > { %644 = vmatmul.mubr.f32.gmra.mxu1 %v1317_v37  ;;  %488 = vmatprep.mubr.f32.mxu0 %v966_v43  ;;  %v800_v37 = vadd.f32 %v1412_v51, %v778_v44 }
  0x5f   : > { %649 = vmatprep.mubr.f32.mxu1 %v966_v43 }
  0x61   : > { %489 = vmatmul.mubr.f32.gmra.mxu0 %v1320_v38 }
  0x62   : > { %650 = vmatmul.mubr.f32.gmra.mxu1 %v1325_v40  ;;  %494 = vmatprep.mubr.f32.mxu0 %v966_v43  ;;  %v801_v40 = vadd.f32 %v1412_v51, %v779_v45  ;;  %v1525_v45 = vsub.f32 %v1342_v47, %v1339_v46 }
  0x63   : > { %655 = vmatprep.mubr.f32.mxu1 %v966_v43 }
  0x65   : > { %495 = vmatmul.mubr.f32.gmra.mxu0 %v1328_v41 }
  0x66   : > { %656 = vmatmul.mubr.f32.gmra.mxu1 %v1331_v42  ;;  %500 = vmatprep.mubr.f32.mxu0 %v966_v43 }
  0x67   : > { %661 = vmatprep.mubr.f32.mxu1 %v966_v43 }
  0x69   : > { %501 = vmatmul.mubr.f32.gmra.mxu0 %v1339_v46 }
  0x6a   : > { %662 = vmatmul.mubr.f32.gmra.mxu1 %v1342_v47 }
  0xed   : > { %v412_v49 = vpop.f32.mrf.mxu0 }
  0xee   : > { %v573_v50 = vpop.f32.mrf.mxu1 }
  0xef   : > { %v574_v54 = vadd.f32 %v573_v50, %v412_v49  ;;  %v414_v55 = vpop.f32.mrf.mxu0 }
  0xf0   : > { %v575_v59 = vpop.f32.mrf.mxu1 }
  0xf1   : > { %vm668_vm0 = vcmp.gt.f32.partialorder %v574_v54, 0.0  ;;  %v684_v60 = vmul.f32 0.2, %v574_v54  ;;  %v576_v1 = vadd.f32 %v575_v59, %v414_v55  ;;  %v418_v7 = vpop.f32.mrf.mxu0 }
  0xf2   : > { %v579_v8 = vpop.f32.mrf.mxu1 }
  0xf3   : > { %v700_v14 = vsel %vm668_vm0, %v574_v54, %v684_v60  ;;  %v732_v15 = vmul.f32 0.2, %v576_v1  ;;  %v580_v20 = vadd.f32 %v579_v8, %v418_v7  ;;  %vm716_vm1 = vcmp.gt.f32.partialorder %v576_v1, 0.0  ;;  %v420_v43 = vpop.f32.mrf.mxu0 }
  0xf4   : > { %v803_v30 = vmul.f32 %v1412_v51, %v700_v14  ;;  %v581_v49 = vpop.f32.mrf.mxu1 }
  0xf5   : > { %vm669_vm2 = vcmp.gt.f32.partialorder %v580_v20, 0.0  ;;  %v685_v50 = vmul.f32 0.2, %v580_v20  ;;  %v582_v48 = vadd.f32 %v581_v49, %v420_v43  ;;  %v424_v56 = vpop.f32.mrf.mxu0  ;;  %v748_v54 = vsel %vm716_vm1, %v576_v1, %v732_v15 }
  0xf6   : > { %v819_v53 = vadd.f32 %v803_v30, %v787_v2  ;;  %v585_v55 = vpop.f32.mrf.mxu1  ;;  %v789_v30 = vadd.f32 %v1412_v51, %v767_v3 }
  0xf7   : > { %v701_v59 = vsel %vm669_vm2, %v580_v20, %v685_v50  ;;  %v733_v60 = vmul.f32 0.2, %v582_v48  ;;  %v586_v7 = vadd.f32 %v585_v55, %v424_v56  ;;  %vm717_vm3 = vcmp.gt.f32.partialorder %v582_v48, 0.0  ;;  %v426_v57 = vpop.f32.mrf.mxu0 }
  0xf8   : > { %v835_v8 = vadd.f32 %v819_v53, %v748_v54  ;;  %v804_v14 = vmul.f32 %v1412_v51, %v701_v59  ;;  %v587_v58 = vpop.f32.mrf.mxu1 }
  0xf9   : > { %vm670_vm4 = vcmp.gt.f32.partialorder %v586_v7, 0.0  ;;  %v686_v61 = vmul.f32 0.2, %v586_v7  ;;  %v588_v2 = vadd.f32 %v587_v58, %v426_v57  ;;  %v430_v1 = vpop.f32.mrf.mxu0  ;;  %v749_v20 = vsel %vm717_vm3, %v582_v48, %v733_v60 }
  0xfa   : > { %851 = vst [vmem:[%s1427_s22] sm:$0xff] %v835_v8  ;;  %v820_v43 = vadd.f32 %v804_v14, %v788_v52  ;;  %v591_v15 = vpop.f32.mrf.mxu1 }
  0xfb   : > { %v702_v49 = vsel %vm670_vm4, %v586_v7, %v686_v61  ;;  %v734_v50 = vmul.f32 0.2, %v588_v2  ;;  %v592_v53 = vadd.f32 %v591_v15, %v430_v1  ;;  %vm718_vm5 = vcmp.gt.f32.partialorder %v588_v2, 0.0  ;;  %v432_v54 = vpop.f32.mrf.mxu0 }
  0xfc   : > { %v836_v56 = vadd.f32 %v820_v43, %v749_v20  ;;  %v805_v55 = vmul.f32 %v1412_v51, %v702_v49  ;;  %v593_v59 = vpop.f32.mrf.mxu1 }
  0xfd   : > { %vm671_vm6 = vcmp.gt.f32.partialorder %v592_v53, 0.0  ;;  %v687_v57 = vmul.f32 0.2, %v592_v53  ;;  %v594_v62 = vadd.f32 %v593_v59, %v432_v54  ;;  %v436_v48 = vpop.f32.mrf.mxu0  ;;  %v750_v60 = vsel %vm718_vm5, %v588_v2, %v734_v50 }
  0xfe   : > { %852 = vst [vmem:[%s1427_s22 + $0x8] sm:$0xff] %v836_v56  ;;  %v821_v3 = vadd.f32 %v805_v55, %v789_v30  ;;  %v597_v52 = vpop.f32.mrf.mxu1 }
  0xff   : > { %v703_v7 = vsel %vm671_vm6, %v592_v53, %v687_v57  ;;  %v735_v8 = vmul.f32 0.2, %v594_v62  ;;  %v598_v14 = vadd.f32 %v597_v52, %v436_v48  ;;  %vm719_vm7 = vcmp.gt.f32.partialorder %v594_v62, 0.0  ;;  %v438_v43 = vpop.f32.mrf.mxu0 }
 0x100   : > { %v837_v58 = vadd.f32 %v821_v3, %v750_v60  ;;  %v806_v61 = vmul.f32 %v1412_v51, %v703_v7  ;;  %v599_v1 = vpop.f32.mrf.mxu1 }
 0x101   : > { %vm672_vm8 = vcmp.gt.f32.partialorder %v598_v14, 0.0  ;;  %v688_v15 = vmul.f32 0.2, %v598_v14  ;;  %v600_v0 = vadd.f32 %v599_v1, %v438_v43  ;;  %v442_v2 = vpop.f32.mrf.mxu0  ;;  %v751_v20 = vsel %vm719_vm7, %v594_v62, %v735_v8 }
 0x102   : > { %853 = vst [vmem:[%s1427_s22 + $0x10] sm:$0xff] %v837_v58  ;;  %v822_v9 = vadd.f32 %v806_v61, %v790_v63  ;;  %v603_v30 = vpop.f32.mrf.mxu1 }
 0x103   : > { %v704_v49 = vsel %vm672_vm8, %v598_v14, %v688_v15  ;;  %v736_v50 = vmul.f32 0.2, %v600_v0  ;;  %v604_v53 = vadd.f32 %v603_v30, %v442_v2  ;;  %vm720_vm9 = vcmp.gt.f32.partialorder %v600_v0, 0.0  ;;  %v444_v54 = vpop.f32.mrf.mxu0 }
 0x104   : > { %v838_v56 = vadd.f32 %v822_v9, %v751_v20  ;;  %v807_v55 = vmul.f32 %v1412_v51, %v704_v49  ;;  %v605_v59 = vpop.f32.mrf.mxu1 }
 0x105   : > { %vm673_vm10 = vcmp.gt.f32.partialorder %v604_v53, 0.0  ;;  %v689_v57 = vmul.f32 0.2, %v604_v53  ;;  %v606_v5 = vadd.f32 %v605_v59, %v444_v54  ;;  %v448_v62 = vpop.f32.mrf.mxu0  ;;  %v752_v3 = vsel %vm720_vm9, %v600_v0, %v736_v50 }
 0x106   : > { %854 = vst [vmem:[%s1427_s22 + $0x18] sm:$0xff] %v838_v56  ;;  %v823_v10 = vadd.f32 %v807_v55, %v791_v4  ;;  %v609_v63 = vpop.f32.mrf.mxu1 }
 0x107   : > { %v705_v48 = vsel %vm673_vm10, %v604_v53, %v689_v57  ;;  %v737_v52 = vmul.f32 0.2, %v606_v5  ;;  %v610_v60 = vadd.f32 %v609_v63, %v448_v62  ;;  %vm721_vm11 = vcmp.gt.f32.partialorder %v606_v5, 0.0  ;;  %v450_v14 = vpop.f32.mrf.mxu0 }
 0x108   : > { %v839_v7 = vadd.f32 %v823_v10, %v752_v3  ;;  %v808_v8 = vmul.f32 %v1412_v51, %v705_v48  ;;  %v611_v58 = vpop.f32.mrf.mxu1 }
 0x109   : > { %vm674_vm12 = vcmp.gt.f32.partialorder %v610_v60, 0.0  ;;  %v690_v61 = vmul.f32 0.2, %v610_v60  ;;  %v612_v11 = vadd.f32 %v611_v58, %v450_v14  ;;  %v454_v43 = vpop.f32.mrf.mxu0  ;;  %v753_v15 = vsel %vm721_vm11, %v606_v5, %v737_v52 }
 0x10a   : > { %855 = vst [vmem:[%s1427_s22 + $0x20] sm:$0xff] %v839_v7  ;;  %v824_v16 = vadd.f32 %v808_v8, %v792_v6  ;;  %v615_v1 = vpop.f32.mrf.mxu1 }
 0x10b   : > { %v706_v0 = vsel %vm674_vm12, %v610_v60, %v690_v61  ;;  %v738_v4 = vmul.f32 0.2, %v612_v11  ;;  %v616_v9 = vadd.f32 %v615_v1, %v454_v43  ;;  %vm722_vm13 = vcmp.gt.f32.partialorder %v612_v11, 0.0  ;;  %v456_v20 = vpop.f32.mrf.mxu0 }
 0x10c   : > { %v840_v2 = vadd.f32 %v824_v16, %v753_v15  ;;  %v809_v30 = vmul.f32 %v1412_v51, %v706_v0  ;;  %v617_v49 = vpop.f32.mrf.mxu1 }
 0x10d   : > { %vm675_vm14 = vcmp.gt.f32.partialorder %v616_v9, 0.0  ;;  %v691_v50 = vmul.f32 0.2, %v616_v9  ;;  %v618_v13 = vadd.f32 %v617_v49, %v456_v20  ;;  %v460_v53 = vpop.f32.mrf.mxu0  ;;  %v754_v55 = vsel %vm722_vm13, %v612_v11, %v738_v4 }
 0x10e   : > { %856 = vst [vmem:[%s1427_s22 + $0x28] sm:$0xff] %v840_v2  ;;  %v825_v21 = vadd.f32 %v809_v30, %v793_v12  ;;  %v621_v56 = vpop.f32.mrf.mxu1 }
 0x10f   : > { %v707_v54 = vsel %vm675_vm14, %v616_v9, %v691_v50  ;;  %v739_v59 = vmul.f32 0.2, %v618_v13  ;;  %v622_v57 = vadd.f32 %v621_v56, %v460_v53  ;;  %vm723_vm15 = vcmp.gt.f32.partialorder %v618_v13, 0.0  ;;  %v462_v10 = vpop.f32.mrf.mxu0 }
 0x110   : > { %v841_v5 = vadd.f32 %v825_v21, %v754_v55  ;;  %v810_v6 = vmul.f32 %v1412_v51, %v707_v54  ;;  %v623_v62 = vpop.f32.mrf.mxu1 }
 0x111   : > { %vm676_vm0 = vcmp.gt.f32.partialorder %v622_v57, 0.0  ;;  %v692_v63 = vmul.f32 0.2, %v622_v57  ;;  %v624_v18 = vadd.f32 %v623_v62, %v462_v10  ;;  %v466_v3 = vpop.f32.mrf.mxu0  ;;  %v755_v52 = vsel %vm723_vm15, %v618_v13, %v739_v59 }
 0x112   : > { %857 = vst [vmem:[%s1427_s22 + $0x30] sm:$0xff] %v841_v5  ;;  %v826_v25 = vadd.f32 %v810_v6, %v794_v17  ;;  %v627_v48 = vpop.f32.mrf.mxu1 }
 0x113   : > { %v708_v60 = vsel %vm676_vm0, %v622_v57, %v692_v63  ;;  %v740_v7 = vmul.f32 0.2, %v624_v18  ;;  %v628_v8 = vadd.f32 %v627_v48, %v466_v3  ;;  %vm724_vm1 = vcmp.gt.f32.partialorder %v624_v18, 0.0  ;;  %v468_v61 = vpop.f32.mrf.mxu0 }
 0x114   : > { %v842_v14 = vadd.f32 %v826_v25, %v755_v52  ;;  %v811_v58 = vmul.f32 %v1412_v51, %v708_v60  ;;  %v629_v11 = vpop.f32.mrf.mxu1 }
 0x115   : > { %vm677_vm2 = vcmp.gt.f32.partialorder %v628_v8, 0.0  ;;  %v693_v12 = vmul.f32 0.2, %v628_v8  ;;  %v630_v22 = vadd.f32 %v629_v11, %v468_v61  ;;  %v472_v16 = vpop.f32.mrf.mxu0  ;;  %v756_v1 = vsel %vm724_vm1, %v624_v18, %v740_v7 }
 0x116   : > { %858 = vst [vmem:[%s1427_s22 + $0x38] sm:$0xff] %v842_v14  ;;  %v827_v26 = vadd.f32 %v811_v58, %v795_v19  ;;  %v633_v43 = vpop.f32.mrf.mxu1 }
 0x117   : > { %v709_v15 = vsel %vm677_vm2, %v628_v8, %v693_v12  ;;  %v741_v0 = vmul.f32 0.2, %v630_v22  ;;  %v634_v4 = vadd.f32 %v633_v43, %v472_v16  ;;  %vm725_vm3 = vcmp.gt.f32.partialorder %v630_v22, 0.0  ;;  %v474_v30 = vpop.f32.mrf.mxu0 }
 0x118   : > { %v843_v9 = vadd.f32 %v827_v26, %v756_v1  ;;  %v812_v2 = vmul.f32 %v1412_v51, %v709_v15  ;;  %v635_v20 = vpop.f32.mrf.mxu1 }
 0x119   : > { %vm678_vm4 = vcmp.gt.f32.partialorder %v634_v4, 0.0  ;;  %v694_v49 = vmul.f32 0.2, %v634_v4  ;;  %v636_v24 = vadd.f32 %v635_v20, %v474_v30  ;;  %v478_v50 = vpop.f32.mrf.mxu0  ;;  %v757_v17 = vsel %vm725_vm3, %v630_v22, %v741_v0 }
 0x11a   : > { %859 = vst [vmem:[%s1427_s22 + $0x40] sm:$0xff] %v843_v9  ;;  %v828_v31 = vadd.f32 %v812_v2, %v796_v23  ;;  %v639_v13 = vpop.f32.mrf.mxu1 }
 0x11b   : > { %v710_v21 = vsel %vm678_vm4, %v634_v4, %v694_v49  ;;  %v742_v53 = vmul.f32 0.2, %v636_v24  ;;  %v640_v56 = vadd.f32 %v639_v13, %v478_v50  ;;  %vm726_vm5 = vcmp.gt.f32.partialorder %v636_v24, 0.0  ;;  %v480_v59 = vpop.f32.mrf.mxu0 }
 0x11c   : > { %v844_v55 = vadd.f32 %v828_v31, %v757_v17  ;;  %v813_v54 = vmul.f32 %v1412_v51, %v710_v21  ;;  %v641_v57 = vpop.f32.mrf.mxu1 }
 0x11d   : > { %vm679_vm6 = vcmp.gt.f32.partialorder %v640_v56, 0.0  ;;  %v695_v5 = vmul.f32 0.2, %v640_v56  ;;  %v642_v28 = vadd.f32 %v641_v57, %v480_v59  ;;  %v484_v6 = vpop.f32.mrf.mxu0  ;;  %v758_v62 = vsel %vm726_vm5, %v636_v24, %v742_v53 }
 0x11e   : > { %860 = vst [vmem:[%s1427_s22 + $0x48] sm:$0xff] %v844_v55  ;;  %v829_v32 = vadd.f32 %v813_v54, %v797_v27  ;;  %v645_v10 = vpop.f32.mrf.mxu1  ;;  %v802_v59 = vadd.f32 %v1412_v51, %v1525_v45 }
 0x11f   : > { %v711_v63 = vsel %vm679_vm6, %v640_v56, %v695_v5  ;;  %v743_v18 = vmul.f32 0.2, %v642_v28  ;;  %v646_v19 = vadd.f32 %v645_v10, %v484_v6  ;;  %vm727_vm7 = vcmp.gt.f32.partialorder %v642_v28, 0.0  ;;  %v486_v48 = vpop.f32.mrf.mxu0 }
 0x120   : > { %v845_v25 = vadd.f32 %v829_v32, %v758_v62  ;;  %v814_v3 = vmul.f32 %v1412_v51, %v711_v63  ;;  %v647_v52 = vpop.f32.mrf.mxu1 }
 0x121   : > { %vm680_vm8 = vcmp.gt.f32.partialorder %v646_v19, 0.0  ;;  %v696_v60 = vmul.f32 0.2, %v646_v19  ;;  %v648_v33 = vadd.f32 %v647_v52, %v486_v48  ;;  %v490_v7 = vpop.f32.mrf.mxu0  ;;  %v759_v14 = vsel %vm727_vm7, %v642_v28, %v743_v18 }
 0x122   : > { %861 = vst [vmem:[%s1427_s22 + $0x50] sm:$0xff] %v845_v25  ;;  %v830_v35 = vadd.f32 %v814_v3, %v798_v29  ;;  %v651_v8 = vpop.f32.mrf.mxu1 }
 0x123   : > { %v712_v58 = vsel %vm680_vm8, %v646_v19, %v696_v60  ;;  %v744_v61 = vmul.f32 0.2, %v648_v33  ;;  %v652_v11 = vadd.f32 %v651_v8, %v490_v7  ;;  %vm728_vm9 = vcmp.gt.f32.partialorder %v648_v33, 0.0  ;;  %v492_v23 = vpop.f32.mrf.mxu0 }
 0x124   : > { %v846_v12 = vadd.f32 %v830_v35, %v759_v14  ;;  %v815_v22 = vmul.f32 %v1412_v51, %v712_v58  ;;  %v653_v26 = vpop.f32.mrf.mxu1 }
 0x125   : > { %vm681_vm10 = vcmp.gt.f32.partialorder %v652_v11, 0.0  ;;  %v697_v16 = vmul.f32 0.2, %v652_v11  ;;  %v654_v36 = vadd.f32 %v653_v26, %v492_v23  ;;  %v496_v43 = vpop.f32.mrf.mxu0  ;;  %v760_v15 = vsel %vm728_vm9, %v648_v33, %v744_v61 }
 0x126   : > { %862 = vst [vmem:[%s1427_s22 + $0x58] sm:$0xff] %v846_v12  ;;  %v831_v39 = vadd.f32 %v815_v22, %v799_v34  ;;  %v657_v1 = vpop.f32.mrf.mxu1 }
 0x127   : > { %v713_v0 = vsel %vm681_vm10, %v652_v11, %v697_v16  ;;  %v745_v4 = vmul.f32 0.2, %v654_v36  ;;  %v658_v9 = vadd.f32 %v657_v1, %v496_v43  ;;  %vm729_vm11 = vcmp.gt.f32.partialorder %v654_v36, 0.0  ;;  %v498_v20 = vpop.f32.mrf.mxu0 }
 0x128   : > { %v847_v2 = vadd.f32 %v831_v39, %v760_v15  ;;  %v816_v30 = vmul.f32 %v1412_v51, %v713_v0  ;;  %v659_v49 = vpop.f32.mrf.mxu1 }
 0x129   : > { %vm682_vm12 = vcmp.gt.f32.partialorder %v658_v9, 0.0  ;;  %v698_v24 = vmul.f32 0.2, %v658_v9  ;;  %v660_v38 = vadd.f32 %v659_v49, %v498_v20  ;;  %v502_v27 = vpop.f32.mrf.mxu0  ;;  %v761_v50 = vsel %vm729_vm11, %v654_v36, %v745_v4 }
 0x12a   : > { %863 = vst [vmem:[%s1427_s22 + $0x60] sm:$0xff] %v847_v2  ;;  %v832_v44 = vadd.f32 %v816_v30, %v800_v37  ;;  %v663_v31 = vpop.f32.mrf.mxu1 }
 0x12b   : > { %v714_v13 = vsel %vm682_vm12, %v658_v9, %v698_v24  ;;  %v746_v17 = vmul.f32 0.2, %v660_v38  ;;  %v664_v21 = vadd.f32 %v663_v31, %v502_v27  ;;  %vm730_vm13 = vcmp.gt.f32.partialorder %v660_v38, 0.0  ;;  %v504_v55 = vpop.f32.mrf.mxu0 }
 0x12c   : > { %v848_v53 = vadd.f32 %v832_v44, %v761_v50  ;;  %v817_v56 = vmul.f32 %v1412_v51, %v714_v13  ;;  %v665_v54 = vpop.f32.mrf.mxu1 }
 0x12d   : > { %vm683_vm14 = vcmp.gt.f32.partialorder %v664_v21, 0.0  ;;  %v699_v41 = vmul.f32 0.2, %v664_v21  ;;  %v666_v42 = vadd.f32 %v665_v54, %v504_v55  ;;  %v762_v5 = vsel %vm730_vm13, %v660_v38, %v746_v17 }
 0x12e   : > { %864 = vst [vmem:[%s1427_s22 + $0x68] sm:$0xff] %v848_v53  ;;  %v833_v57 = vadd.f32 %v817_v56, %v801_v40 }
 0x12f   : > { %v715_v28 = vsel %vm683_vm14, %v664_v21, %v699_v41  ;;  %v747_v29 = vmul.f32 0.2, %v666_v42  ;;  %vm731_vm15 = vcmp.gt.f32.partialorder %v666_v42, 0.0 }
 0x130   : > { %v849_v32 = vadd.f32 %v833_v57, %v762_v5  ;;  %v818_v6 = vmul.f32 %v1412_v51, %v715_v28 }
 0x131   : > { %v763_v62 = vsel %vm731_vm15, %v666_v42, %v747_v29 }
 0x132   : > { %865 = vst [vmem:[%s1427_s22 + $0x70] sm:$0xff] %v849_v32  ;;  %v834_v10 = vadd.f32 %v818_v6, %v802_v59 }
 0x134   : > { %v850_v63 = vadd.f32 %v834_v10, %v763_v62 }
 0x136   : > { %866 = vst [vmem:[%s1427_s22 + $0x78] sm:$0xff] %v850_v63 }
 0x137 PF: > { %s15_s18 = sadd.s32 1, %s964_s18  }
 0x138   : > { %p12_p4 = scmp.ge.s32.totalorder %s15_s18, 4  }
 0x13a   :  { %14 = sbr.rel (!%p12_p4) target bundleno = 1 (0x1), region = 73 }

</bundles_post_ra>
